<compile_context>
chip_gen: v6e
topology: v6e:2x2x1
jax: 0.10.0
libtpu: 0.0.40
codegen_flags: <defaults>
</compile_context>

<pallas_src>
import math

import jax
import jax.numpy as jnp
from jax import lax
from jax.experimental import pallas as pl
from jax.experimental.pallas import tpu as pltpu

_HALF_LOG_2PI = 0.5 * math.log(2.0 * math.pi)
_TWO_PI = 2.0 * math.pi


def _mix32(x):
    """murmur3-style 32-bit finalizer; plain VPU ops only (portable)."""
    x = x ^ (x >> jnp.uint32(16))
    x = x * jnp.uint32(0x7FEB352D)
    x = x ^ (x >> jnp.uint32(15))
    x = x * jnp.uint32(0x846CA68B)
    x = x ^ (x >> jnp.uint32(16))
    return x


def _uniform01(bits_u32):
    """uint32 random bits -> float32 uniform in [0, 1) from the top 24 bits."""
    hi = lax.bitcast_convert_type(bits_u32 >> jnp.uint32(8), jnp.int32)
    return hi.astype(jnp.float32) * jnp.float32(1.0 / (1 << 24))


def _make_gauss_kernel(tile_b, m, with_log_prob):
    """Build the sampling kernel for one (tile_b, 2*m) block of x."""
    half = (tile_b + 1) // 2  # Box-Muller emits rows in (cos, sin) pairs

    def kernel(seed_ref, x_ref, *out_refs):
        out_ref = out_refs[0]

        # NOTE: these lane slices are free when m is a multiple of 128; for other
        # widths they still work but may cost an in-VMEM relayout.
        mean = x_ref[:, :m]
        log_std = x_ref[:, m:]
        std = jnp.exp(log_std)

        # ---- counter-based PRNG keyed on (seed, tile, pair-row, lane) --------
        # Unique counters per element => independent streams per tile (and per
        # TensorCore on v7x) without re-seeding a stateful generator.
        pid = pl.program_id(0)
        row = lax.broadcasted_iota(jnp.int32, (half, m), 0)
        col = lax.broadcasted_iota(jnp.int32, (half, m), 1)
        seed = seed_ref[0]
        ctr = (pid * half + row) * m + col + seed * jnp.int32(16777619)
        h = _mix32(lax.bitcast_convert_type(ctr, jnp.uint32) * jnp.uint32(0x9E3779B1))
        u1 = _uniform01(_mix32(h ^ jnp.uint32(0x85EBCA6B)))
        u2 = _uniform01(_mix32(h ^ jnp.uint32(0xC2B2AE35)))

        # ---- Box-Muller, using BOTH outputs (halves EUP transcendentals) -----
        r = jnp.sqrt(-2.0 * jnp.log(1.0 - u1))      # 1 - u1 in (0, 1] -> finite log
        theta = jnp.float32(_TWO_PI) * u2
        z = jnp.concatenate([r * jnp.cos(theta), r * jnp.sin(theta)], axis=0)
        if z.shape[0] != tile_b:                    # odd tile: drop the spare row
            z = z[:tile_b, :]

        sample = mean + std * z
        out_ref[...] = sample.astype(out_ref.dtype)

        if with_log_prob:
            logp_ref = out_refs[1]
            logp = -0.5 * z * z - log_std - jnp.float32(_HALF_LOG_2PI)
            logp_ref[...] = logp.astype(logp_ref.dtype)

    return kernel


def _pick_tile_b(batch, m, with_log_prob):
    """Batch tile sized from a VMEM budget that fits v5e/v6e/v7x comfortably."""
    # Double-buffered f32 bytes per row: input (2m) + sample (m) [+ log_prob (m)].
    bytes_per_row = 2 * 4 * (2 * m + m + (m if with_log_prob else 0))
    budget = 16 * 1024 * 1024
    tile = budget // max(bytes_per_row, 1)
    tile = max(8, min(tile, 2048))   # big enough to amortize ~0.35us/step grid overhead
    if tile >= batch:
        return batch                 # single block covers the whole (small) batch
    return max(8, (tile // 8) * 8)   # sublane-aligned (and even, for Box-Muller pairs)


def _gauss_sample(x2d, seed, with_log_prob, tile_b=None):
    batch, two_m = x2d.shape
    m = two_m // 2
    if tile_b is None:
        tile_b = _pick_tile_b(batch, m, with_log_prob)
    tile_b = int(min(tile_b, batch))
    grid = (pl.cdiv(batch, tile_b),)

    kernel = _make_gauss_kernel(tile_b, m, with_log_prob)

    out_shape = [jax.ShapeDtypeStruct((batch, m), x2d.dtype)]
    out_specs = [pl.BlockSpec((tile_b, m), lambda i, seed_ref: (i, 0))]
    if with_log_prob:
        out_shape.append(jax.ShapeDtypeStruct((batch, m), jnp.float32))
        out_specs.append(pl.BlockSpec((tile_b, m), lambda i, seed_ref: (i, 0)))

    n = batch * m
    cost = pl.CostEstimate(
        flops=16 * n,                      # hash + Box-Muller VPU work
        transcendentals=3 * n,             # exp + (log+sqrt+cos+sin)/2 per element
        bytes_accessed=(8 + 4 + (4 if with_log_prob else 0)) * n,
    )

    seed_arr = jnp.asarray([seed], dtype=jnp.int32)

    outs = pl.pallas_call(
        kernel,
        out_shape=tuple(out_shape),
        grid_spec=pltpu.PrefetchScalarGridSpec(
            num_scalar_prefetch=1,
            grid=grid,
            in_specs=[pl.BlockSpec((tile_b, two_m), lambda i, seed_ref: (i, 0))],
            out_specs=tuple(out_specs),
        ),
        compiler_params=pltpu.CompilerParams(
            dimension_semantics=("parallel",),       # v7x: shard tiles across both TCs
            vmem_limit_bytes=32 * 1024 * 1024,
        ),
        cost_estimate=cost,
    )(seed_arr, x2d)

    sample = outs[0]
    log_prob = outs[1] if with_log_prob else None
    return sample, log_prob


def gauss_layer_forward(x, seed=0, deterministic=False, pretrain=False,
                        training=True, tile_b=None):
    """JAX/Pallas equivalent of GaussLayer.forward.

    Returns (out, log_prob); log_prob is None unless sampling in training mode
    (mirrors the module only storing self.log_prob when self.training).
    """
    if x.ndim == 1:
        x = x.reshape(-1, 1)
    m = x.shape[-1] // 2

    if deterministic:
        return x[..., :m], None

    lead = x.shape[:-1]
    x2d = x.reshape((-1, x.shape[-1]))

    need_logp = training and not pretrain
    sample, log_prob = _gauss_sample(x2d, seed, need_logp, tile_b=tile_b)
    sample = sample.reshape(lead + (m,))

    if pretrain:
        # TODO(synk): rsample() forward values match sample(); reparameterized
        # gradients would need a custom_vjp (d out/d mean = 1, d out/d log_std = std*z).
        return sample, None
    if training:
        return sample, log_prob.reshape(lead + (m,))
    return sample, None


if __name__ == "__main__":
    key = jax.random.PRNGKey(0)
    batch, m = 16, 128            # x carries 2*m features: [means | log-stds]
    x = jax.random.normal(key, (batch, 2 * m), dtype=jnp.float32) * 0.5

    mean_ref = x[:, :m]
    log_std_ref = x[:, m:]
    std_ref = jnp.exp(log_std_ref)

    # Training mode: sample + log_prob (single-block grid).
    out, log_prob = gauss_layer_forward(x, seed=42, training=True)
    out = jax.block_until_ready(out)
    log_prob = jax.block_until_ready(log_prob)
    assert out.shape == (batch, m) and log_prob.shape == (batch, m)
    assert bool(jnp.all(jnp.isfinite(out))) and bool(jnp.all(jnp.isfinite(log_prob)))
    lp_closed = (-0.5 * ((out - mean_ref) / std_ref) ** 2
                 - log_std_ref - 0.5 * math.log(2.0 * math.pi))
    assert bool(jnp.allclose(log_prob, lp_closed, atol=1e-4, rtol=1e-4))

    # Multi-tile path (grid=(2,)): per-tile counter offsets keep streams independent.
    out_t, log_prob_t = gauss_layer_forward(x, seed=42, training=True, tile_b=8)
    out_t = jax.block_until_ready(out_t)
    log_prob_t = jax.block_until_ready(log_prob_t)
    lp_closed_t = (-0.5 * ((out_t - mean_ref) / std_ref) ** 2
                   - log_std_ref - 0.5 * math.log(2.0 * math.pi))
    assert bool(jnp.all(jnp.isfinite(out_t)))
    assert bool(jnp.allclose(log_prob_t, lp_closed_t, atol=1e-4, rtol=1e-4))

    # Eval / pretrain paths: sample-only kernel variant (no log_prob HBM traffic).
    out_eval, lp_eval = gauss_layer_forward(x, seed=7, training=False)
    jax.block_until_ready(out_eval)
    assert lp_eval is None and out_eval.shape == (batch, m)
    out_pre, lp_pre = gauss_layer_forward(x, seed=7, pretrain=True)
    jax.block_until_ready(out_pre)
    assert lp_pre is None and out_pre.shape == (batch, m)

    # Deterministic branch: just the mean half, no sampling.
    det, _ = gauss_layer_forward(x, deterministic=True)
    det = jax.block_until_ready(det)
    assert bool(jnp.allclose(det, mean_ref))

    print("KERNEL_OK")
</pallas_src>

<mosaic_0001>
module attributes {stable_mosaic.version = 11 : i64} {
  func.func @kernel(%arg0: i32, %arg1: memref<1xi32, #tpu.memory_space<smem>>, %arg2: memref<16x256xf32, #tpu.memory_space<vmem>>, %arg3: memref<16x128xf32, #tpu.memory_space<vmem>>, %arg4: memref<16x128xf32, #tpu.memory_space<vmem>>) attributes {dimension_semantics = [#tpu.dimension_semantics<parallel>], iteration_bounds = array<i64: 1>, scalar_prefetch = 1 : i64, scratch_operands = 0 : i64, tpu.core_type = #tpu.core_type<tc>, window_params = [{transform_indices = @transform_0, window_bounds = array<i64: 16, 256>}, {transform_indices = @transform_1, window_bounds = array<i64: 16, 128>}, {transform_indices = @transform_2, window_bounds = array<i64: 16, 128>}]} {
    %c0 = arith.constant 0 : index
    %c0_0 = arith.constant 0 : index
    %0 = vector.load %arg2[%c0, %c0_0] : memref<16x256xf32, #tpu.memory_space<vmem>>, vector<16x128xf32>
    %c0_1 = arith.constant 0 : index
    %c128 = arith.constant 128 : index
    %1 = vector.load %arg2[%c0_1, %c128] : memref<16x256xf32, #tpu.memory_space<vmem>>, vector<16x128xf32>
    %2 = math.exp %1 : vector<16x128xf32>
    %3 = tpu.iota {dimensions = array<i32: 0>} : vector<8x128xi32>
    %4 = tpu.iota {dimensions = array<i32: 1>} : vector<8x128xi32>
    %c0_2 = arith.constant 0 : index
    %5 = memref.load %arg1[%c0_2] : memref<1xi32, #tpu.memory_space<smem>>
    %c8_i32 = arith.constant 8 : i32
    %6 = arith.muli %arg0, %c8_i32 : i32
    %7 = vector.broadcast %6 : i32 to vector<8x128xi32>
    %8 = arith.addi %7, %3 : vector<8x128xi32>
    %c128_i32 = arith.constant 128 : i32
    %9 = vector.broadcast %c128_i32 : i32 to vector<8x128xi32>
    %10 = arith.muli %8, %9 : vector<8x128xi32>
    %11 = arith.addi %10, %4 : vector<8x128xi32>
    %c16777619_i32 = arith.constant 16777619 : i32
    %12 = arith.muli %5, %c16777619_i32 : i32
    %13 = vector.broadcast %12 : i32 to vector<8x128xi32>
    %14 = arith.addi %11, %13 : vector<8x128xi32>
    %15 = tpu.bitcast %14 : vector<8x128xi32> -> vector<8x128xi32>
    %c-1640531535_i32 = arith.constant -1640531535 : i32
    %16 = vector.broadcast %c-1640531535_i32 : i32 to vector<8x128xi32>
    %17 = arith.muli %15, %16 : vector<8x128xi32>
    %c16_i32 = arith.constant 16 : i32
    %18 = vector.broadcast %c16_i32 : i32 to vector<8x128xi32>
    %19 = arith.shrui %17, %18 : vector<8x128xi32>
    %20 = arith.xori %17, %19 : vector<8x128xi32>
    %c2146121005_i32 = arith.constant 2146121005 : i32
    %21 = vector.broadcast %c2146121005_i32 : i32 to vector<8x128xi32>
    %22 = arith.muli %20, %21 : vector<8x128xi32>
    %c15_i32 = arith.constant 15 : i32
    %23 = vector.broadcast %c15_i32 : i32 to vector<8x128xi32>
    %24 = arith.shrui %22, %23 : vector<8x128xi32>
    %25 = arith.xori %22, %24 : vector<8x128xi32>
    %c-2073254261_i32 = arith.constant -2073254261 : i32
    %26 = vector.broadcast %c-2073254261_i32 : i32 to vector<8x128xi32>
    %27 = arith.muli %25, %26 : vector<8x128xi32>
    %c16_i32_3 = arith.constant 16 : i32
    %28 = vector.broadcast %c16_i32_3 : i32 to vector<8x128xi32>
    %29 = arith.shrui %27, %28 : vector<8x128xi32>
    %30 = arith.xori %27, %29 : vector<8x128xi32>
    %c-2048144789_i32 = arith.constant -2048144789 : i32
    %31 = vector.broadcast %c-2048144789_i32 : i32 to vector<8x128xi32>
    %32 = arith.xori %30, %31 : vector<8x128xi32>
    %c16_i32_4 = arith.constant 16 : i32
    %33 = vector.broadcast %c16_i32_4 : i32 to vector<8x128xi32>
    %34 = arith.shrui %32, %33 : vector<8x128xi32>
    %35 = arith.xori %32, %34 : vector<8x128xi32>
    %c2146121005_i32_5 = arith.constant 2146121005 : i32
    %36 = vector.broadcast %c2146121005_i32_5 : i32 to vector<8x128xi32>
    %37 = arith.muli %35, %36 : vector<8x128xi32>
    %c15_i32_6 = arith.constant 15 : i32
    %38 = vector.broadcast %c15_i32_6 : i32 to vector<8x128xi32>
    %39 = arith.shrui %37, %38 : vector<8x128xi32>
    %40 = arith.xori %37, %39 : vector<8x128xi32>
    %c-2073254261_i32_7 = arith.constant -2073254261 : i32
    %41 = vector.broadcast %c-2073254261_i32_7 : i32 to vector<8x128xi32>
    %42 = arith.muli %40, %41 : vector<8x128xi32>
    %c16_i32_8 = arith.constant 16 : i32
    %43 = vector.broadcast %c16_i32_8 : i32 to vector<8x128xi32>
    %44 = arith.shrui %42, %43 : vector<8x128xi32>
    %45 = arith.xori %42, %44 : vector<8x128xi32>
    %c8_i32_9 = arith.constant 8 : i32
    %46 = vector.broadcast %c8_i32_9 : i32 to vector<8x128xi32>
    %47 = arith.shrui %45, %46 : vector<8x128xi32>
    %48 = tpu.bitcast %47 : vector<8x128xi32> -> vector<8x128xi32>
    %49 = arith.sitofp %48 : vector<8x128xi32> to vector<8x128xf32>
    %cst = arith.constant 5.96046448E-8 : f32
    %50 = vector.broadcast %cst : f32 to vector<8x128xf32>
    %51 = arith.mulf %49, %50 : vector<8x128xf32>
    %c-1028477387_i32 = arith.constant -1028477387 : i32
    %52 = vector.broadcast %c-1028477387_i32 : i32 to vector<8x128xi32>
    %53 = arith.xori %30, %52 : vector<8x128xi32>
    %c16_i32_10 = arith.constant 16 : i32
    %54 = vector.broadcast %c16_i32_10 : i32 to vector<8x128xi32>
    %55 = arith.shrui %53, %54 : vector<8x128xi32>
    %56 = arith.xori %53, %55 : vector<8x128xi32>
    %c2146121005_i32_11 = arith.constant 2146121005 : i32
    %57 = vector.broadcast %c2146121005_i32_11 : i32 to vector<8x128xi32>
    %58 = arith.muli %56, %57 : vector<8x128xi32>
    %c15_i32_12 = arith.constant 15 : i32
    %59 = vector.broadcast %c15_i32_12 : i32 to vector<8x128xi32>
    %60 = arith.shrui %58, %59 : vector<8x128xi32>
    %61 = arith.xori %58, %60 : vector<8x128xi32>
    %c-2073254261_i32_13 = arith.constant -2073254261 : i32
    %62 = vector.broadcast %c-2073254261_i32_13 : i32 to vector<8x128xi32>
    %63 = arith.muli %61, %62 : vector<8x128xi32>
    %c16_i32_14 = arith.constant 16 : i32
    %64 = vector.broadcast %c16_i32_14 : i32 to vector<8x128xi32>
    %65 = arith.shrui %63, %64 : vector<8x128xi32>
    %66 = arith.xori %63, %65 : vector<8x128xi32>
    %c8_i32_15 = arith.constant 8 : i32
    %67 = vector.broadcast %c8_i32_15 : i32 to vector<8x128xi32>
    %68 = arith.shrui %66, %67 : vector<8x128xi32>
    %69 = tpu.bitcast %68 : vector<8x128xi32> -> vector<8x128xi32>
    %70 = arith.sitofp %69 : vector<8x128xi32> to vector<8x128xf32>
    %cst_16 = arith.constant 5.96046448E-8 : f32
    %71 = vector.broadcast %cst_16 : f32 to vector<8x128xf32>
    %72 = arith.mulf %70, %71 : vector<8x128xf32>
    %cst_17 = arith.constant 1.000000e+00 : f32
    %73 = vector.broadcast %cst_17 : f32 to vector<8x128xf32>
    %74 = arith.subf %73, %51 : vector<8x128xf32>
    %75 = math.log %74 : vector<8x128xf32>
    %cst_18 = arith.constant -2.000000e+00 : f32
    %76 = vector.broadcast %cst_18 : f32 to vector<8x128xf32>
    %77 = arith.mulf %76, %75 : vector<8x128xf32>
    %78 = math.sqrt %77 : vector<8x128xf32>
    %cst_19 = arith.constant 6.28318548 : f32
    %79 = vector.broadcast %cst_19 : f32 to vector<8x128xf32>
    %80 = arith.mulf %79, %72 : vector<8x128xf32>
    %81 = math.cos %80 : vector<8x128xf32>
    %82 = arith.mulf %78, %81 : vector<8x128xf32>
    %83 = math.sin %80 : vector<8x128xf32>
    %84 = arith.mulf %78, %83 : vector<8x128xf32>
    %85 = tpu.concatenate %82, %84 in 0 : vector<8x128xf32>, vector<8x128xf32> -> vector<16x128xf32>
    %86 = arith.mulf %2, %85 : vector<16x128xf32>
    %87 = arith.addf %0, %86 : vector<16x128xf32>
    %c0_20 = arith.constant 0 : index
    %c0_21 = arith.constant 0 : index
    %88 = vector.load %arg3[%c0_20, %c0_21] : memref<16x128xf32, #tpu.memory_space<vmem>>, vector<16x128xf32>
    tpu.vector_store %arg3[%c0_20, %c0_21], %87 {strides = array<i32>} : memref<16x128xf32, #tpu.memory_space<vmem>>, vector<16x128xf32>,
    %cst_22 = arith.constant -5.000000e-01 : f32
    %89 = vector.broadcast %cst_22 : f32 to vector<16x128xf32>
    %90 = arith.mulf %89, %85 : vector<16x128xf32>
    %91 = arith.mulf %90, %85 : vector<16x128xf32>
    %92 = arith.subf %91, %1 : vector<16x128xf32>
    %cst_23 = arith.constant 0.918938517 : f32
    %93 = vector.broadcast %cst_23 : f32 to vector<16x128xf32>
    %94 = arith.subf %92, %93 : vector<16x128xf32>
    %c0_24 = arith.constant 0 : index
    %c0_25 = arith.constant 0 : index
    %95 = vector.load %arg4[%c0_24, %c0_25] : memref<16x128xf32, #tpu.memory_space<vmem>>, vector<16x128xf32>
    tpu.vector_store %arg4[%c0_24, %c0_25], %94 {strides = array<i32>} : memref<16x128xf32, #tpu.memory_space<vmem>>, vector<16x128xf32>,
    return
  }
  func.func @transform_0(%arg0: i32, %arg1: memref<1xi32, #tpu.memory_space<smem>>) -> (i32, i32) {
    %c0_i32 = arith.constant 0 : i32
    %c0_i32_0 = arith.constant 0 : i32
    return %arg0, %c0_i32 : i32, i32
  }
  func.func @transform_1(%arg0: i32, %arg1: memref<1xi32, #tpu.memory_space<smem>>) -> (i32, i32) {
    %c0_i32 = arith.constant 0 : i32
    %c0_i32_0 = arith.constant 0 : i32
    return %arg0, %c0_i32 : i32, i32
  }
  func.func @transform_2(%arg0: i32, %arg1: memref<1xi32, #tpu.memory_space<smem>>) -> (i32, i32) {
    %c0_i32 = arith.constant 0 : i32
    %c0_i32_0 = arith.constant 0 : i32
    return %arg0, %c0_i32 : i32, i32
  }
}

</mosaic_0001>

<bundles_post_ra>
// kernel: tpu_custom_call.1
= control target key start
LH: loop header
LB: loop body
LE: loop exit
PB: predicated region body
PF: predicated region fallthrough
CT: control target
= control target key end

     0   :  { %10 = vsyncpa [#allocation5], 0  ;;  %s531_s0 = inlined_call_operand.<no memory space> [shape: s32[1], index: 0, kind: input, shape index: {}]   ;;  %s532_s1 = inlined_call_operand.hbm [shape: f32[16,256], index: 1, kind: input, shape index: {}]   ;;  %s533_s2 = inlined_call_operand.hbm [shape: f32[16,128], index: 2, kind: output, shape index: {0}]   ;;  %s534_s3 = inlined_call_operand.hbm [shape: f32[16,128], index: 3, kind: output, shape index: {1}]  }
   0x1   :  { %11 = vsyncpa [#allocation6], 0 }
   0x2   :  { %12 = vsyncpa [#allocation9], 0  ;;  %s457_s12 = smov [#allocation4]  }
   0x3   :  { %s18_s13 = sshll.u32 %s457_s12, 4  ;;  %s19_s13 = int_to_ptr.vmem [resolvable:$true] %s18_s13 }
   0x4   :  { %s399_s14 = scalar_lea.vmem %s19_s13, 512  ;;  %p404_p1 = scmp.lt.s32.totalorder %s19_s13, %s19_s13 }
   0x5   :  { %p400_p0 = scmp.ne.s32.totalorder %s19_s13, %s399_s14  ;;  %p405_p2 = scmp.lt.s32.totalorder %s399_s14, %s399_s14 }
   0x7   :  { %p406_p3 = por %p405_p2, %p404_p1 }
   0x9   :  { %p407_p4 = pnand %p406_p3, %p400_p0 }
   0xb   :  { %410 = shalt.err (!%p407_p4)
}
   0xc   :  { %s458_s15 = smov 256   ;;  %s459_s16 = smov 16  }
   0xd   :  { %24 = dma.hbm_to_vmem [thread:$0]  %s532_s1, 512, %s19_s13, [#allocation5], %s458_s15, %s458_s15, %s459_s16  }
   0xe   :  { %451 = dma.done.wait [#allocation5], 512  }
   0xf   :  { %452 = vsyncadd [#allocation5], 4294966784  ;;  %v36_v0 = vlaneseq  ;;  %s46_s21 = smul.u32 16777619, %s531_s0  ;;  %v460_v47 = vmov 683565275  }
  0x10   :  { %v461_v49 = vmov 2475754826   ;;  %v462_v51 = vmov 2131351028   ;;  %v463_v53 = vmov 2102212464  }
  0x11   :  { %v37_v1 = vshrl.u32 %v36_v0, 7  ;;  %v39_v2 = vand.u32 127, %v36_v0  ;;  %v47_v4 = vstv %s46_s21  ;;  %v464_v55 = vmov 920167782   ;;  %s466_s0 = smov [#allocation7]   ;;  %s467_s22 = smov [#allocation8]  }
  0x12   :  { %v465_v0 = vmov 1326507024   ;;  %s324_s1 = sshll.u32 %s466_s0, 4  ;;  %s336_s23 = sshll.u32 %s467_s22, 4  ;;  %s325_s1 = int_to_ptr.vmem [resolvable:$true] %s324_s1  ;;  %s337_s23 = int_to_ptr.vmem [resolvable:$true] %s336_s23 }
  0x13   :  { %v44_v3 = vmul.u32 128, %v37_v1  ;;  %s411_s24 = scalar_lea.vmem %s325_s1, 256  ;;  %p416_p6 = scmp.lt.s32.totalorder %s325_s1, %s325_s1 }
  0x14   :  { %p412_p5 = scmp.ne.s32.totalorder %s325_s1, %s411_s24  ;;  %p417_p7 = scmp.lt.s32.totalorder %s411_s24, %s411_s24 }
  0x15   :  { %v45_v5 = vadd.s32 %v44_v3, %v39_v2 }
  0x16   :  { %p418_p8 = por %p417_p7, %p416_p6 }
  0x17   :  { %v48_v6 = vadd.s32 %v47_v4, %v45_v5 }
  0x18   :  { %p419_p9 = pnand %p418_p8, %p412_p5 }
  0x19   :  { %v49_v7 = vmul.u32 2654435761, %v48_v6 }
  0x1b   :  { %v50_v8 = vshrl.u32 %v49_v7, 16 }
  0x1d   :  { %v51_v9 = vxor.u32 %v50_v8, %v49_v7 }
  0x1f   :  { %v52_v10 = vmul.u32 2146121005, %v51_v9 }
  0x21   :  { %v53_v11 = vshrl.u32 %v52_v10, 15 }
  0x23   :  { %v54_v12 = vxor.u32 %v53_v11, %v52_v10 }
  0x25   :  { %v55_v13 = vmul.u32 2221713035, %v54_v12 }
  0x27   :  { %v56_v14 = vshrl.u32 %v55_v13, 16 }
  0x29   :  { %v57_v15 = vxor.u32 %v56_v14, %v55_v13 }
  0x2b   :  { %v70_v16 = vxor.u32 3266489909, %v57_v15  ;;  %v58_v20 = vxor.u32 2246822507, %v57_v15 }
  0x2d   :  { %v71_v17 = vshrl.u32 %v70_v16, 16  ;;  %v59_v23 = vshrl.u32 %v58_v20, 16 }
  0x2f   :  { %v72_v18 = vxor.u32 %v71_v17, %v70_v16  ;;  %v60_v26 = vxor.u32 %v59_v23, %v58_v20 }
  0x31   :  { %v73_v19 = vmul.u32 2146121005, %v72_v18  ;;  %v61_v29 = vmul.u32 2146121005, %v60_v26 }
  0x33   :  { %v74_v21 = vshrl.u32 %v73_v19, 15  ;;  %v62_v32 = vshrl.u32 %v61_v29, 15 }
  0x35   :  { %v75_v22 = vxor.u32 %v74_v21, %v73_v19  ;;  %v63_v35 = vxor.u32 %v62_v32, %v61_v29 }
  0x37   :  { %v76_v24 = vmul.u32 2221713035, %v75_v22  ;;  %v64_v38 = vmul.u32 2221713035, %v63_v35 }
  0x39   :  { %v77_v25 = vshrl.u32 %v76_v24, 16  ;;  %v65_v42 = vshrl.u32 %v64_v38, 16 }
  0x3b   :  { %v78_v27 = vxor.u32 %v77_v25, %v76_v24  ;;  %v66_v57 = vxor.u32 %v65_v42, %v64_v38 }
  0x3d   :  { %v79_v28 = vshrl.u32 %v78_v27, 8  ;;  %v67_v7 = vshrl.u32 %v66_v57, 8 }
  0x3f   :  { %v80_v30 = vcvt.s32.f32 %v79_v28  ;;  %v68_v23 = vcvt.s32.f32 %v67_v7 }
  0x41   :  { %v81_v31 = vmul.f32 5.9604645e-08, %v80_v30  ;;  %v69_v28 = vmul.f32 5.9604645e-08, %v68_v23 }
  0x43   :  { %v496_v33 = vmul.f32 6.2831855, %v81_v31  ;;  %v82_v31 = vsub.f32 1.0, %v69_v28  ;;  %v29_v28 = vld [vmem:[#allocation4 + $0x10] sm:$0xff] }
  0x45   :  { %v97_v34 = vand.u32 2139095040, %v496_v33  ;;  %v94_v39 = vand.u32 2147483647, %v496_v33  ;;  %379 = vlog2.f32 %v82_v31  ;;  %vm96_vm7 = vcmp.lt.s32.totalorder %v496_v33, 0 }
  0x47   :  { %v98_v36 = vshrl.u32 %v97_v34, 23  ;;  %v101_v43 = vand.u32 8388607, %v94_v39  ;;  %vm95_vm8 = vcmp.le.f32.partialorder %v94_v39, 0.7853982 }
  0x49   :  { %v352_v37 = vadd.s32 4294967169, %v98_v36  ;;  %v102_v58 = vor.u32 8388608, %v101_v43 }
  0x4b   :  { %v104_v40 = vadd.s32 1, %v352_v37  ;;  %v142_v8 = vshll.u32 %v102_v58, 8 }
  0x4d   :  { %vm105_vm0 = vcmp.gt.s32.totalorder %v104_v40, 0 }
  0x4e   :  { %v106_v41 = vsel %vm105_vm0, %v104_v40, 0 }
  0x4f   :  { %v108_v44 = vand.u32 31, %v106_v41  ;;  %v107_v45 = vshrl.u32 %v106_v41, 5 }
  0x51   :  { %v109_v46 = vsub.s32 32, %v108_v44  ;;  %v111_v48 = vshll.u32 %v460_v47, %v108_v44  ;;  %v114_v50 = vshll.u32 %v461_v49, %v108_v44  ;;  %v117_v52 = vshll.u32 %v462_v51, %v108_v44 }
  0x52   :  { %v120_v54 = vshll.u32 %v463_v53, %v108_v44  ;;  %v123_v56 = vshll.u32 %v464_v55, %v108_v44  ;;  %vm126_vm1 = vcmp.lt.s32.totalorder %v107_v45, 1  ;;  %vm129_vm2 = vcmp.lt.s32.totalorder %v107_v45, 4  ;;  %v380_v43 = vpop.eup %379 }
  0x53   :  { %v112_v59 = vshrl.u32 %v461_v49, %v109_v46  ;;  %v115_v60 = vshrl.u32 %v462_v51, %v109_v46  ;;  %v110_v61 = vshrl.u32 %v460_v47, %v109_v46  ;;  %v118_v62 = vshrl.u32 %v463_v53, %v109_v46 }
  0x54   :  { %v121_v63 = vshrl.u32 %v464_v55, %v109_v46  ;;  %v124_v1 = vshrl.u32 %v465_v0, %v109_v46  ;;  %vm128_vm3 = vcmp.lt.s32.totalorder %v107_v45, 3  ;;  %vm127_vm4 = vcmp.lt.s32.totalorder %v107_v45, 2  ;;  %v518_v0 = vld [vmem:[#allocation4 + $0x18] sm:$0xff] }
  0x55   :  { %v113_v2 = vor.u32 %v112_v59, %v111_v48  ;;  %v116_v3 = vor.u32 %v115_v60, %v114_v50  ;;  %v119_v4 = vor.u32 %v118_v62, %v117_v52  ;;  %v84_v48 = vmul.f32 0.6931472, %v380_v43  ;;  %v515_v60 = vld [vmem:[#allocation4 + $0x8] sm:$0xff] }
  0x56   :  { %v122_v5 = vor.u32 %v121_v63, %v120_v54  ;;  %v125_v6 = vor.u32 %v124_v1, %v123_v56  ;;  %v32_v1 = vmul.f32 1.442695, %v515_v60 }
  0x57   :  { %v130_v9 = vsel %vm126_vm1, %v110_v61, %v113_v2  ;;  %v131_v10 = vsel %vm129_vm2, %v119_v4, 2102212464  ;;  %v134_v11 = vsel %vm126_vm1, %v113_v2, %v116_v3  ;;  %v138_v15 = vsel %vm126_vm1, %v116_v3, %v119_v4 }
  0x58   :  { %v135_v12 = vsel %vm129_vm2, %v122_v5, 920167782  ;;  %v132_v13 = vsel %vm128_vm3, %v116_v3, %v131_v10  ;;  %v139_v16 = vsel %vm129_vm2, %v125_v6, 1326507024  ;;  %v85_v53 = vmul.f32 -2.0, %v84_v48 }
  0x59   :  { %v136_v14 = vsel %vm128_vm3, %v119_v4, %v135_v12  ;;  %v140_v18 = vsel %vm128_vm3, %v122_v5, %v139_v16  ;;  %v133_v19 = vsel %vm127_vm4, %v130_v9, %v132_v13  ;;  %v34_v3 = vmul.f32 1.442695, %v518_v0 }
  0x5a   :  { %v137_v17 = vsel %vm127_vm4, %v134_v11, %v136_v14  ;;  %v141_v20 = vsel %vm127_vm4, %v138_v15, %v140_v18  ;;  %v149_v26 = vmul.u32 %v142_v8, %v133_v19  ;;  %381 = vrsqrt.f32 %v85_v53 }
  0x5b   :  { %v502_v21 = vmul.u32.u64.low %v142_v8, %v137_v17  ;;  %v503_v22 = vmul.u32.u64.high %v142_v8, %v137_v17, %v502_v21  ;;  %v505_v24 = vmul.u32.u64.low %v142_v8, %v141_v20  ;;  %v506_v25 = vmul.u32.u64.high %v142_v8, %v141_v20, %v505_v24 }
  0x5c   :  { %vm88_vm9 = vcmp.eq.f32.partialorder %v85_v53, inf  ;;  %vm90_vm10 = vcmp.eq.f32.partialorder %v85_v53, 0.0  ;;  %v91_v9 = vand.u32 2147483648, %v85_v53  ;;  %vm186_vm1 = vweird.f32 %v496_v33 }
  0x5d   :  { %v152_v27 = vadd.s32 1, %v503_v22  ;;  %vm151_vm5 = vc.u32 %v506_v25, %v502_v21  ;;  %v150_v42 = vadd.s32 %v502_v21, %v506_v25 }
  0x5f   :  { %v153_v29 = vsel %vm151_vm5, %v152_v27, %v503_v22  ;;  %v28_v27 = vld [vmem:[#allocation4] sm:$0xff] }
  0x60   :  { %v154_v30 = vadd.s32 %v153_v29, %v149_v26 }
  0x62   :  { %v155_v32 = vadd.s32 536870912, %v154_v30 }
  0x64   :  { %v156_v34 = vshrl.u32 %v155_v32, 30 }
  0x66   :  { %v157_v35 = vshll.u32 %v156_v34, 30  ;;  %v180_v58 = vsub.s32 4, %v156_v34 }
  0x67   :  { %v382_v39 = vpop.eup %381 }
  0x68   :  { %v158_v36 = vsub.s32 %v154_v30, %v157_v35  ;;  %v181_v62 = vsel %vm96_vm7, %v180_v58, %v156_v34  ;;  %v87_v7 = vmul.f32 %v382_v39, %v85_v53 }
  0x69   :  { %v183_v2 = vsel %vm95_vm8, 0, %v181_v62 }
  0x6a   :  { %v160_v37 = vsub.s32 0, %v158_v36  ;;  %v291_v4 = vadd.s32 3, %v183_v2  ;;  %v187_v5 = vand.u32 3, %v183_v2  ;;  %v89_v11 = vsel %vm88_vm9, %v85_v53, %v87_v7 }
  0x6b   :  { %v92_v16 = vsel %vm90_vm10, %v91_v9, %v89_v11 }
  0x6c   :  { %v353_v38 = vmin.u32 %v160_v37, %v158_v36  ;;  %v292_v6 = vand.u32 3, %v291_v4  ;;  %vm192_vm11 = vcmp.eq.s32.totalorder %v187_v5, 2  ;;  %vm189_vm13 = vcmp.eq.s32.totalorder %v187_v5, 0 }
  0x6d   :  { %vm188_vm15 = vcmp.lt.s32.totalorder %v187_v5, 2 }
  0x6e   :  { %v162_v40 = vclz %v353_v38  ;;  %vm297_vm12 = vcmp.eq.s32.totalorder %v292_v6, 2  ;;  %vm294_vm14 = vcmp.eq.s32.totalorder %v292_v6, 0  ;;  %vm293_vm0 = vcmp.lt.s32.totalorder %v292_v6, 2 }
  0x70   :  { %v354_v41 = vadd.s32 4294967294, %v162_v40 }
  0x72   :  { %vm355_vm6 = vcmp.lt.s32.totalorder %v354_v41, 0 }
  0x73   :  { %v165_v44 = vsel %vm355_vm6, 0, %v354_v41 }
  0x74   :  { %v166_v45 = vsub.s32 32, %v165_v44  ;;  %v167_v46 = vshll.u32 %v158_v36, %v165_v44  ;;  %v170_v47 = vsub.s32 4294967266, %v165_v44 }
  0x76   :  { %v168_v49 = vshrl.u32 %v150_v42, %v166_v45  ;;  %v171_v50 = vadd.s32 127, %v170_v47 }
  0x78   :  { %v169_v51 = vor.u32 %v168_v49, %v167_v46  ;;  %v172_v52 = vshll.u32 %v171_v50, 23 }
  0x7a   :  { %v173_v54 = vor.u32 4788187, %v172_v52  ;;  %v176_v55 = vcvt.s32.f32 %v169_v51 }
  0x7c   :  { %v174_v56 = vand.u32 2147483647, %v173_v54 }
  0x7e   :  { %v177_v57 = vmul.f32 %v176_v55, %v174_v56 }
  0x80   :  { %v178_v59 = vxor.u32 2147483648, %v177_v57 }
  0x82   :  { %v179_v61 = vsel %vm96_vm7, %v178_v59, %v177_v57 }
  0x83   :  { %v182_v63 = vsel %vm95_vm8, %v496_v33, %v179_v61 }
  0x84   :  { %383 = vcosq.f32 %v182_v63 }
  0x85   :  { %385 = vsinq.f32 %v182_v63 }
  0x86   :  { %387 = vpow2.f32 %v32_v1 }
  0x87   :  { %389 = vpow2.f32 %v34_v3 }
  0x91   :  { %v384_v8 = vpop.eup %383 }
  0x92   :  { %v386_v10 = vpop.eup %385  ;;  %v193_v12 = vxor.u32 2147483648, %v384_v8 }
  0x93   :  { %v190_v13 = vxor.u32 2147483648, %v386_v10  ;;  %v388_v19 = vpop.eup %387 }
  0x94   :  { %v194_v14 = vsel %vm192_vm11, %v193_v12, %v386_v10  ;;  %v299_v15 = vsel %vm297_vm12, %v193_v12, %v386_v10  ;;  %v390_v22 = vpop.eup %389 }
  0x95   :  { %v191_v17 = vsel %vm189_vm13, %v384_v8, %v190_v13  ;;  %v296_v18 = vsel %vm294_vm14, %v384_v8, %v190_v13 }
  0x96   :  { %v195_v20 = vsel %vm188_vm15, %v191_v17, %v194_v14  ;;  %v300_v21 = vsel %vm293_vm0, %v296_v18, %v299_v15 }
  0x97   :  { %v196_v23 = vsel %vm186_vm1, nan, %v195_v20  ;;  %v301_v24 = vsel %vm186_vm1, nan, %v300_v21 }
  0x98   :  { %v197_v25 = vmul.f32 %v196_v23, %v92_v16  ;;  %v302_v26 = vmul.f32 %v301_v24, %v92_v16 }
  0x9a   :  { %v303_v29 = vmul.f32 %v388_v19, %v197_v25  ;;  %v304_v30 = vmul.f32 %v390_v22, %v302_v26  ;;  %v309_v33 = vmul.f32 -0.5, %v197_v25  ;;  %v310_v31 = vmul.f32 -0.5, %v302_v26 }
  0x9c   :  { %v305_v32 = vadd.f32 %v303_v29, %v28_v27  ;;  %v306_v34 = vadd.f32 %v304_v30, %v29_v28  ;;  %v311_v35 = vmul.f32 %v309_v33, %v197_v25  ;;  %v312_v36 = vmul.f32 %v310_v31, %v302_v26 }
  0x9e   :  { %307 = vst [vmem:[#allocation7] sm:$0xff] %v305_v32  ;;  %308 = vst [vmem:[#allocation7 + $0x8] sm:$0xff] %v306_v34  ;;  %v313_v37 = vsub.f32 %v311_v35, %v515_v60  ;;  %v314_v38 = vsub.f32 %v312_v36, %v518_v0 }
  0x9f   :  { %422 = shalt.err (!%p419_p9)
}
  0xa0   :  { %s468_s25 = smov 128   ;;  %s469_s26 = smov 8   ;;  %v360_v40 = vadd.f32 -0.9189385, %v313_v37  ;;  %v361_v41 = vadd.f32 -0.9189385, %v314_v38 }
  0xa1   :  { %330 = dma.vmem_to_hbm [thread:$0]  %s325_s1, 256, %s533_s2, [#allocation6], %s468_s25, %s468_s25, %s469_s26  }
  0xa2   :  { %317 = vst [vmem:[#allocation8] sm:$0xff] %v360_v40  ;;  %318 = vst [vmem:[#allocation8 + $0x8] sm:$0xff] %v361_v41  ;;  %s431_s29 = scalar_lea.vmem %s337_s23, 256  ;;  %p436_p11 = scmp.lt.s32.totalorder %s337_s23, %s337_s23 }
  0xa3   :  { %p432_p10 = scmp.ne.s32.totalorder %s337_s23, %s431_s29  ;;  %p437_p12 = scmp.lt.s32.totalorder %s431_s29, %s431_s29 }
  0xa5   :  { %p438_p13 = por %p437_p12, %p436_p11 }
  0xa7   :  { %p439_p0 = pnand %p438_p13, %p432_p10 }
  0xa9   :  { %442 = shalt.err (!%p439_p0)
}
  0xaa   :  { %342 = dma.vmem_to_hbm [thread:$0]  %s337_s23, 256, %s534_s3, [#allocation9], %s468_s25, %s468_s25, %s469_s26  }
  0xab   :  { %453 = dma.done.wait [#allocation6], 256  }
  0xac   :  { %454 = vsyncadd [#allocation6], 4294967040 }
  0xad   :  { %455 = dma.done.wait [#allocation9], 256  }
  0xae   :  { %456 = vsyncadd [#allocation9], 4294967040 }
  0xaf   :  { %349 = vsyncpa [#allocation5], 1 }
  0xb0   :  { %350 = vsyncpa [#allocation6], 1 }
  0xb1   :  { %351 = vsyncpa [#allocation9], 1 }

</bundles_post_ra>
